<compile_context>
chip_gen: v7x
topology: tpu7x:2x2x1
jax: 0.10.0
libtpu: 0.0.40
codegen_flags: <defaults>
</compile_context>

<pallas_src>
import math
import functools

import jax
import jax.numpy as jnp
from jax.experimental import pallas as pl
from jax.experimental.pallas import tpu as pltpu

NEG_INF = -1e30


def _round_up(x, m):
    return (x + m - 1) // m * m


def _pick_tile(dim, max_tile, granule):
    """Largest legal tile <= max_tile; returns (tile, padded_dim).
    A full-dim block is always legal, so dim <= max_tile needs no padding."""
    if dim <= max_tile:
        return dim, dim
    t = (max_tile // granule) * granule
    while t > granule and dim % t != 0:
        t -= granule
    return t, _round_up(dim, t)


@functools.lru_cache(maxsize=None)
def _device_config():
    """Per-chip tiling / VMEM budget (v5e/v6e: 128 MiB VMEM, v7x: 64 MiB)."""
    try:
        vmem = getattr(pltpu.get_tpu_info(), "vmem_capacity_bytes",
                       128 * 1024 * 1024)
    except Exception:  # conservative fallback: assume the small-VMEM part
        vmem = 64 * 1024 * 1024
    if vmem <= 80 * 1024 * 1024:          # v7x-class (64 MiB per TensorCore)
        return dict(vmem_limit=48 * 1024 * 1024, attn_tile=128,
                    mm_tm=256, mm_tn=512, mm_tk=512, rms_tn=1024)
    return dict(vmem_limit=100 * 1024 * 1024, attn_tile=256,
                mm_tm=512, mm_tn=512, mm_tk=1024, rms_tn=2048)


# --------------------------- tiled matmul kernel ----------------------------

def _matmul_kernel(x_ref, w_ref, o_ref, acc_ref):
    @pl.when(pl.program_id(2) == 0)
    def _():
        acc_ref[...] = jnp.zeros_like(acc_ref)

    acc_ref[...] += jnp.dot(x_ref[...], w_ref[...],
                            preferred_element_type=jnp.float32)

    @pl.when(pl.program_id(2) == pl.num_programs(2) - 1)
    def _():
        o_ref[...] = acc_ref[...].astype(o_ref.dtype)


def linear(x2d, wrec, *, out_dtype=jnp.bfloat16):
    """y = x2d @ W, with W pre-transposed/padded/bf16 in wrec (from prepare_params)."""
    dc = _device_config()
    M, K = x2d.shape
    assert K == wrec["K"]
    Kp, Np = wrec["w"].shape
    tk, tn, N = wrec["tk"], wrec["tn"], wrec["N"]
    tm, Mp = _pick_tile(M, dc["mm_tm"], 8)

    x = x2d.astype(jnp.bfloat16)
    if Mp != M or Kp != K:
        x = jnp.pad(x, ((0, Mp - M), (0, Kp - K)))

    out = pl.pallas_call(
        _matmul_kernel,
        out_shape=jax.ShapeDtypeStruct((Mp, Np), out_dtype),
        grid=(Mp // tm, Np // tn, Kp // tk),
        in_specs=[pl.BlockSpec((tm, tk), lambda i, j, k: (i, k)),
                  pl.BlockSpec((tk, tn), lambda i, j, k: (k, j))],
        out_specs=pl.BlockSpec((tm, tn), lambda i, j, k: (i, j)),
        scratch_shapes=[pltpu.VMEM((tm, tn), jnp.float32)],
        compiler_params=pltpu.CompilerParams(
            dimension_semantics=("parallel", "parallel", "arbitrary"),
            vmem_limit_bytes=dc["vmem_limit"]),
    )(x, wrec["w"])
    if Mp != M or Np != N:
        out = out[:M, :N]
    return out


# ---------------------- fused RMSNorm + matmul kernel ------------------------

def _rmsnorm_matmul_kernel(x_ref, g_ref, w_ref, o_ref, *, inv_k, eps):
    x = x_ref[...].astype(jnp.float32)                       # (tm, K) full K
    ms = jnp.sum(x * x, axis=-1, keepdims=True) * inv_k      # true-K mean
    xn = (x * jax.lax.rsqrt(ms + eps) * g_ref[...]).astype(w_ref.dtype)
    o_ref[...] = jnp.dot(xn, w_ref[...],
                         preferred_element_type=jnp.float32).astype(o_ref.dtype)


def rmsnorm_linear(x2d, gamma, wrec, *, eps=1e-6, out_dtype=jnp.bfloat16):
    """y = RMSNorm(x2d; gamma) @ W.  K (= lora rank) is kept whole for the norm."""
    dc = _device_config()
    M, K = x2d.shape
    assert K == wrec["K"] and wrec["w"].shape[0] == K
    Np = wrec["w"].shape[1]
    tn, N = wrec["tn"], wrec["N"]
    tm, Mp = _pick_tile(M, dc["mm_tm"], 8)

    x = x2d.astype(jnp.bfloat16)
    if Mp != M:
        x = jnp.pad(x, ((0, Mp - M), (0, 0)))

    kern = functools.partial(_rmsnorm_matmul_kernel, inv_k=1.0 / K, eps=eps)
    out = pl.pallas_call(
        kern,
        out_shape=jax.ShapeDtypeStruct((Mp, Np), out_dtype),
        grid=(Mp // tm, Np // tn),
        in_specs=[pl.BlockSpec((tm, K), lambda i, j: (i, 0)),
                  pl.BlockSpec((1, K), lambda i, j: (0, 0)),
                  pl.BlockSpec((K, tn), lambda i, j: (0, j))],
        out_specs=pl.BlockSpec((tm, tn), lambda i, j: (i, j)),
        compiler_params=pltpu.CompilerParams(
            dimension_semantics=("parallel", "parallel"),
            vmem_limit_bytes=dc["vmem_limit"]),
    )(x, gamma, wrec["w"])
    if Mp != M or Np != N:
        out = out[:M, :N]
    return out


# -------------------- flash-style causal MLA attention ----------------------

def _mla_attention_kernel(qn_ref, qr_ref, kn_ref, kr_ref, v_ref, o_ref,
                          m_ref, l_ref, acc_ref, *, tq, tkv):
    qi = pl.program_id(1)
    kvi = pl.program_id(2)

    @pl.when(kvi == 0)
    def _init():
        m_ref[...] = jnp.full_like(m_ref, NEG_INF)
        l_ref[...] = jnp.zeros_like(l_ref)
        acc_ref[...] = jnp.zeros_like(acc_ref)

    def _scores():
        # natural (tq, H, d) layout -> (H, tq, d) in-kernel (XLU relayout)
        H = qn_ref.shape[2]
        rd = qr_ref.shape[3]
        qn = jnp.transpose(qn_ref[0], (1, 0, 2))             # (H, tq, nd) bf16
        qr = jnp.transpose(qr_ref[0], (1, 0, 2))             # (H, tq, rd) bf16
        kn = jnp.transpose(kn_ref[0], (1, 0, 2))             # (H, tkv, nd)
        kr = kr_ref[0]                                        # (tkv, rd) shared
        s = jnp.einsum('hqd,hkd->hqk', qn, kn,
                       preferred_element_type=jnp.float32)
        # head-shared rope keys: contract directly, no broadcast materialization
        s_r = jax.lax.dot_general(
            qr.reshape(H * tq, rd), kr,
            dimension_numbers=(((1,), (1,)), ((), ())),
            preferred_element_type=jnp.float32).reshape(H, tq, tkv)
        return s + s_r

    def _update(s):
        v = jnp.transpose(v_ref[0], (1, 0, 2))                # (H, tkv, hd) bf16
        m_prev = m_ref[...]                                   # (H, tq, 1)
        m_new = jnp.maximum(m_prev, jnp.max(s, axis=-1, keepdims=True))
        alpha = jnp.exp(m_prev - m_new)
        p = jnp.exp(s - m_new)                                # (H, tq, tkv)
        l_ref[...] = alpha * l_ref[...] + jnp.sum(p, axis=-1, keepdims=True)
        acc_ref[...] = alpha * acc_ref[...] + jnp.einsum(
            'hqk,hkd->hqd', p.astype(v.dtype), v,
            preferred_element_type=jnp.float32)
        m_ref[...] = m_new

    # strictly-past kv tile: no mask work at all
    @pl.when(kvi < qi)
    def _full():
        _update(_scores())

    # diagonal tile (tkv == tq -> local indices are the global causal mask)
    @pl.when(kvi == qi)
    def _diag():
        s = _scores()
        row = jax.lax.broadcasted_iota(jnp.int32, (tq, tkv), 0)
        col = jax.lax.broadcasted_iota(jnp.int32, (tq, tkv), 1)
        s = jnp.where((col <= row)[None, :, :], s, NEG_INF)
        _update(s)

    @pl.when(kvi == pl.num_programs(2) - 1)
    def _finalize():
        inv_l = pl.reciprocal(l_ref[...], approx=True)        # EUP (H, tq, 1)
        out = acc_ref[...] * inv_l                            # (H, tq, hd) f32
        # single dense store in the natural (tq, H, hd) output layout
        o_ref[0] = jnp.transpose(out, (1, 0, 2)).astype(o_ref.dtype)


def causal_mla_attention(q_nope, q_rope, k_nope, k_rope, v,
                         *, out_dtype=jnp.bfloat16):
    """Inputs in natural layout: q_nope/q_rope/k_nope/v: (B,S,H,*);
    head-shared rope keys k_rope: (B,S,rd).  Returns (B,S,H,hd)."""
    dc = _device_config()
    B, S, H, nd = q_nope.shape
    rd = q_rope.shape[-1]
    hd = v.shape[-1]

    tq = dc["attn_tile"]
    if S <= tq:
        tq, Sp = S, S
    else:
        Sp = _round_up(S, tq)
    tkv = tq                                   # equal tiles -> clean diagonal mask
    if Sp != S:                                # pad S; causal mask hides padded keys
        p4 = ((0, 0), (0, Sp - S), (0, 0), (0, 0))
        q_nope = jnp.pad(q_nope, p4)
        q_rope = jnp.pad(q_rope, p4)
        k_nope = jnp.pad(k_nope, p4)
        v = jnp.pad(v, p4)
        k_rope = jnp.pad(k_rope, ((0, 0), (0, Sp - S), (0, 0)))
    nq = Sp // tq

    kern = functools.partial(_mla_attention_kernel, tq=tq, tkv=tkv)
    # kv-side index maps clamp j to i: fully-future tiles re-request the previous
    # block (no new DMA) and their compute is skipped by pl.when.
    out = pl.pallas_call(
        kern,
        out_shape=jax.ShapeDtypeStruct((B, Sp, H, hd), out_dtype),
        grid=(B, nq, nq),
        in_specs=[
            pl.BlockSpec((1, tq, H, nd), lambda b, i, j: (b, i, 0, 0)),
            pl.BlockSpec((1, tq, H, rd), lambda b, i, j: (b, i, 0, 0)),
            pl.BlockSpec((1, tkv, H, nd),
                         lambda b, i, j: (b, jnp.minimum(j, i), 0, 0)),
            pl.BlockSpec((1, tkv, rd),
                         lambda b, i, j: (b, jnp.minimum(j, i), 0)),
            pl.BlockSpec((1, tkv, H, hd),
                         lambda b, i, j: (b, jnp.minimum(j, i), 0, 0)),
        ],
        out_specs=pl.BlockSpec((1, tq, H, hd), lambda b, i, j: (b, i, 0, 0)),
        scratch_shapes=[pltpu.VMEM((H, tq, 1), jnp.float32),
                        pltpu.VMEM((H, tq, 1), jnp.float32),
                        pltpu.VMEM((H, tq, hd), jnp.float32)],
        compiler_params=pltpu.CompilerParams(
            dimension_semantics=("parallel", "parallel", "arbitrary"),
            vmem_limit_bytes=dc["vmem_limit"]),
    )(q_nope, q_rope, k_nope, k_rope, v)
    if Sp != S:
        out = out[:, :S]
    return out


# ------------------------------ RoPE (glue) ---------------------------------
# Interleaved-pair (torch.view_as_complex) convention, applied to the small
# rope parts only; trig math in f32.

def apply_rope(x, cos, sin):
    xr = x[..., 0::2].astype(jnp.float32)
    xi = x[..., 1::2].astype(jnp.float32)
    o_r = xr * cos - xi * sin
    o_i = xr * sin + xi * cos
    return jnp.stack([o_r, o_i], axis=-1).reshape(x.shape)


# --------------------------- weight prep & forward --------------------------

def _prep_weight(w_t, tk_max, tn_max):
    """Pre-transpose (done by caller), pre-pad to tile multiples, pre-cast to bf16."""
    dc = _device_config()
    K, N = w_t.shape
    if tk_max is None:                        # fused-norm matmul: K kept whole
        tk, Kp = K, K
    else:
        tk, Kp = _pick_tile(K, tk_max, 128)
    tn, Np = _pick_tile(N, tn_max, 128)
    if Kp != K or Np != N:
        w_t = jnp.pad(w_t, ((0, Kp - K), (0, Np - N)))
    del dc
    return {"w": w_t.astype(jnp.bfloat16), "K": K, "N": N, "tk": tk, "tn": tn}


def prepare_params(params, cfg):
    """One-time prep: transpose, merge decompress weights, fold the SDPA
    1/sqrt(head_dim) scale into the merged q-decompress weight (exact: RoPE is
    a rotation, commutes with scaling), pad + cast to bf16."""
    H, hd = cfg["num_heads"], cfg["head_dim"]
    scale = 1.0 / math.sqrt(hd)
    dc = _device_config()
    W_dq_t = jnp.concatenate(
        [params["W_dq_nope"].T, params["W_dq_rope"].T], axis=1) * scale
    W_dkv_t = jnp.concatenate(
        [params["W_dk_nope"].T, params["W_dv"].T], axis=1)
    return {
        "W_cq":    _prep_weight(params["W_cq"].T, dc["mm_tk"], dc["mm_tn"]),
        "W_ckv":   _prep_weight(params["W_ckv"].T, dc["mm_tk"], dc["mm_tn"]),
        "W_krope": _prep_weight(params["W_krope"].T, dc["mm_tk"], dc["mm_tn"]),
        "W_proj":  _prep_weight(params["W_proj"].T, dc["mm_tk"], dc["mm_tn"]),
        "W_dq":    _prep_weight(W_dq_t, None, dc["rms_tn"]),
        "W_dkv":   _prep_weight(W_dkv_t, None, dc["rms_tn"]),
        "q_norm_w":  params["q_norm_w"].astype(jnp.float32).reshape(1, -1),
        "kv_norm_w": params["kv_norm_w"].astype(jnp.float32).reshape(1, -1),
    }


def mla_forward(x, prep, cos, sin, cfg):
    B, S, D = x.shape
    H, hd, rd = cfg["num_heads"], cfg["head_dim"], cfg["rope_head_dim"]
    nd = hd - rd
    x2 = x.reshape(B * S, D).astype(jnp.bfloat16)

    # query path: compress -> fused(RMSNorm + merged, pre-scaled decompress)
    compressed_q = linear(x2, prep["W_cq"])
    q_dec = rmsnorm_linear(compressed_q, prep["q_norm_w"], prep["W_dq"])
    q_nope = q_dec[:, :H * nd].reshape(B, S, H, nd)          # natural layout
    q_rope = q_dec[:, H * nd:].reshape(B, S, H, rd)

    # key / value path
    compressed_kv = linear(x2, prep["W_ckv"])
    kv_dec = rmsnorm_linear(compressed_kv, prep["kv_norm_w"], prep["W_dkv"])
    k_nope = kv_dec[:, :H * nd].reshape(B, S, H, nd)
    value = kv_dec[:, H * nd:].reshape(B, S, H, hd)
    k_rope = linear(x2, prep["W_krope"]).reshape(B, S, rd)   # shared across heads

    # RoPE on the small rope parts (k_rope stays un-broadcast)
    q_rope = apply_rope(q_rope, cos[:, None, :], sin[:, None, :]).astype(jnp.bfloat16)
    k_rope = apply_rope(k_rope, cos, sin).astype(jnp.bfloat16)

    # flash-style causal attention in natural layout; output (B,S,H,hd) bf16
    attn = causal_mla_attention(q_nope, q_rope, k_nope, k_rope, value)
    attn = attn.reshape(B * S, H * hd)                       # contiguous -> free

    return linear(attn, prep["W_proj"], out_dtype=jnp.float32).reshape(B, S, D)


# ---------------------------- pure-JAX reference -----------------------------

def _rmsnorm_ref(x, w, eps=1e-6):
    ms = jnp.mean(x * x, axis=-1, keepdims=True)
    return x * jax.lax.rsqrt(ms + eps) * w


def mla_reference(x, params, cos, sin, cfg):
    B, S, D = x.shape
    H, hd, rd = cfg["num_heads"], cfg["head_dim"], cfg["rope_head_dim"]
    nd = hd - rd
    x2 = x.reshape(B * S, D)
    nq = _rmsnorm_ref(x2 @ params["W_cq"].T, params["q_norm_w"])
    q_nope = (nq @ params["W_dq_nope"].T).reshape(B, S, H, nd).transpose(0, 2, 1, 3)
    q_rope = (nq @ params["W_dq_rope"].T).reshape(B, S, H, rd).transpose(0, 2, 1, 3)
    nkv = _rmsnorm_ref(x2 @ params["W_ckv"].T, params["kv_norm_w"])
    k_nope = (nkv @ params["W_dk_nope"].T).reshape(B, S, H, nd).transpose(0, 2, 1, 3)
    value = (nkv @ params["W_dv"].T).reshape(B, S, H, hd).transpose(0, 2, 1, 3)
    k_rope = (x2 @ params["W_krope"].T).reshape(B, S, 1, rd).transpose(0, 2, 1, 3)
    q_rope = apply_rope(q_rope, cos, sin)
    k_rope = jnp.broadcast_to(apply_rope(k_rope, cos, sin), (B, H, S, rd))
    q = jnp.concatenate([q_nope, q_rope], axis=-1)
    k = jnp.concatenate([k_nope, k_rope], axis=-1)
    s = jnp.einsum("bhqd,bhkd->bhqk", q, k) / math.sqrt(hd)
    mask = jnp.tril(jnp.ones((S, S), dtype=bool))
    s = jnp.where(mask, s, -jnp.inf)
    p = jax.nn.softmax(s, axis=-1)
    o = jnp.einsum("bhqk,bhkd->bhqd", p, value)
    o = o.transpose(0, 2, 1, 3).reshape(B * S, H * hd)
    return (o @ params["W_proj"].T).reshape(B, S, D)


# ----------------------------------- setup -----------------------------------

def init_params(key, cfg):
    D, H = cfg["d_model"], cfg["num_heads"]
    hd, rd = cfg["head_dim"], cfg["rope_head_dim"]
    nd = hd - rd
    qr, kvr = cfg["q_lora_rank"], cfg["kv_lora_rank"]

    def lin(k, out_f, in_f):
        bound = 1.0 / math.sqrt(in_f)
        return jax.random.uniform(k, (out_f, in_f), jnp.float32, -bound, bound)

    ks = jax.random.split(key, 8)
    return {
        "W_cq":      lin(ks[0], qr, D),
        "W_dq_nope": lin(ks[1], nd * H, qr),
        "W_dq_rope": lin(ks[2], rd * H, qr),
        "W_ckv":     lin(ks[3], kvr, D),
        "W_dk_nope": lin(ks[4], nd * H, kvr),
        "W_dv":      lin(ks[5], hd * H, kvr),
        "W_krope":   lin(ks[6], rd, D),
        "W_proj":    lin(ks[7], D, H * hd),
        "q_norm_w":  jnp.ones((qr,), jnp.float32),
        "kv_norm_w": jnp.ones((kvr,), jnp.float32),
    }


if __name__ == "__main__":
    cfg = dict(d_model=32, num_heads=4, head_dim=16, rope_head_dim=8,
               q_lora_rank=16, kv_lora_rank=16)
    B, S = 2, 8
    rd = cfg["rope_head_dim"]

    key = jax.random.PRNGKey(0)
    kx, kp = jax.random.split(key)
    x = jax.random.normal(kx, (B, S, cfg["d_model"]), jnp.float32)
    params = init_params(kp, cfg)
    prep = prepare_params(params, cfg)

    # freqs_cis as cos/sin, theta = 10000
    pos = jnp.arange(S, dtype=jnp.float32)
    inv_freq = 1.0 / (10000.0 ** (jnp.arange(0, rd, 2, dtype=jnp.float32) / rd))
    ang = pos[:, None] * inv_freq[None, :]          # (S, rd//2)
    cos, sin = jnp.cos(ang), jnp.sin(ang)

    out = jax.block_until_ready(mla_forward(x, prep, cos, sin, cfg))
    ref = jax.block_until_ready(mla_reference(x, params, cos, sin, cfg))

    assert out.shape == (B, S, cfg["d_model"])
    err = float(jnp.max(jnp.abs(out - ref)))
    # bf16 matmuls + approx reciprocal vs. an f32 reference -> relaxed tolerance
    assert jnp.allclose(out, ref, atol=3e-2, rtol=3e-2), f"max abs err = {err}"

    print("KERNEL_OK")
</pallas_src>

<mosaic_0001>
module attributes {stable_mosaic.version = 11 : i64} {
  func.func @_matmul_kernel(%arg0: i32, %arg1: i32, %arg2: i32, %arg3: memref<16x32xbf16, #tpu.memory_space<vmem>>, %arg4: memref<32x16xbf16, #tpu.memory_space<vmem>>, %arg5: memref<16x16xbf16, #tpu.memory_space<vmem>>, %arg6: memref<16x16xf32, #tpu.memory_space<vmem>>) attributes {dimension_semantics = [#tpu.dimension_semantics<parallel>, #tpu.dimension_semantics<parallel>, #tpu.dimension_semantics<arbitrary>], iteration_bounds = array<i64: 1, 1, 1>, scalar_prefetch = 0 : i64, scratch_operands = 1 : i64, tpu.core_type = #tpu.core_type<tc>, window_params = [{transform_indices = @transform_0, window_bounds = array<i64: 16, 32>}, {transform_indices = @transform_1, window_bounds = array<i64: 32, 16>}, {transform_indices = @transform_2, window_bounds = array<i64: 16, 16>}]} {
    %c0_i32 = arith.constant 0 : i32
    %0 = arith.cmpi eq, %arg2, %c0_i32 : i32
    %1 = arith.extui %0 : i1 to i32
    %c0_i32_0 = arith.constant 0 : i32
    %2 = arith.cmpi ne, %1, %c0_i32_0 : i32
    scf.if %2 {
      %cst_10 = arith.constant 0.000000e+00 : f32
      %12 = vector.broadcast %cst_10 : f32 to vector<16x16xf32>
      %c0_11 = arith.constant 0 : index
      %c0_12 = arith.constant 0 : index
      %13 = vector.load %arg6[%c0_11, %c0_12] : memref<16x16xf32, #tpu.memory_space<vmem>>, vector<16x16xf32>
      tpu.vector_store %arg6[%c0_11, %c0_12], %12 {strides = array<i32>} : memref<16x16xf32, #tpu.memory_space<vmem>>, vector<16x16xf32>,
    } else {
    }
    %c0 = arith.constant 0 : index
    %c0_1 = arith.constant 0 : index
    %3 = vector.load %arg6[%c0, %c0_1] : memref<16x16xf32, #tpu.memory_space<vmem>>, vector<16x16xf32>
    %c0_2 = arith.constant 0 : index
    %c0_3 = arith.constant 0 : index
    %4 = vector.load %arg3[%c0_2, %c0_3] : memref<16x32xbf16, #tpu.memory_space<vmem>>, vector<16x32xbf16>
    %c0_4 = arith.constant 0 : index
    %c0_5 = arith.constant 0 : index
    %5 = vector.load %arg4[%c0_4, %c0_5] : memref<32x16xbf16, #tpu.memory_space<vmem>>, vector<32x16xbf16>
    %cst = arith.constant dense<0.000000e+00> : vector<16x16xf32>
    %6 = tpu.matmul %4, %5, %cst {dimension_numbers = #tpu.dot_dimension_numbers<[1], [0], [0], [1], [0, 0, 1, 1], [], []>} : vector<16x32xbf16>, vector<32x16xbf16>, vector<16x16xf32> -> vector<16x16xf32>
    %7 = arith.addf %3, %6 : vector<16x16xf32>
    %c0_6 = arith.constant 0 : index
    %c0_7 = arith.constant 0 : index
    %8 = vector.load %arg6[%c0_6, %c0_7] : memref<16x16xf32, #tpu.memory_space<vmem>>, vector<16x16xf32>
    tpu.vector_store %arg6[%c0_6, %c0_7], %7 {strides = array<i32>} : memref<16x16xf32, #tpu.memory_space<vmem>>, vector<16x16xf32>,
    %c0_i32_8 = arith.constant 0 : i32
    %9 = arith.cmpi eq, %arg2, %c0_i32_8 : i32
    %10 = arith.extui %9 : i1 to i32
    %c0_i32_9 = arith.constant 0 : i32
    %11 = arith.cmpi ne, %10, %c0_i32_9 : i32
    scf.if %11 {
      %c0_10 = arith.constant 0 : index
      %c0_11 = arith.constant 0 : index
      %12 = vector.load %arg6[%c0_10, %c0_11] : memref<16x16xf32, #tpu.memory_space<vmem>>, vector<16x16xf32>
      %13 = arith.truncf %12 : vector<16x16xf32> to vector<16x16xbf16>
      %c0_12 = arith.constant 0 : index
      %c0_13 = arith.constant 0 : index
      %14 = vector.load %arg5[%c0_12, %c0_13] : memref<16x16xbf16, #tpu.memory_space<vmem>>, vector<16x16xbf16>
      tpu.vector_store %arg5[%c0_12, %c0_13], %13 {strides = array<i32>} : memref<16x16xbf16, #tpu.memory_space<vmem>>, vector<16x16xbf16>,
    } else {
    }
    return
  }
  func.func @transform_0(%arg0: i32, %arg1: i32, %arg2: i32) -> (i32, i32) {
    %c0_i32 = arith.constant 0 : i32
    return %arg0, %arg2 : i32, i32
  }
  func.func @transform_1(%arg0: i32, %arg1: i32, %arg2: i32) -> (i32, i32) {
    %c0_i32 = arith.constant 0 : i32
    return %arg2, %arg1 : i32, i32
  }
  func.func @transform_2(%arg0: i32, %arg1: i32, %arg2: i32) -> (i32, i32) {
    %c0_i32 = arith.constant 0 : i32
    return %arg0, %arg1 : i32, i32
  }
}

</mosaic_0001>

<bundles_post_ra>
// kernel: tpu_custom_call.1
= control target key start
LH: loop header
LB: loop body
LE: loop exit
PB: predicated region body
PF: predicated region fallthrough
CT: control target
= control target key end

     0   :  { %v178_v1 = vmov 0.0   ;;  %vm179_vm0 = vmmov 0   ;;  %vm17_vm1 = vcmask 130048   ;;  %s223_s0 = inlined_call_operand.vmem [shape: bf16[16,32], index: 0, kind: input, shape index: {}]   ;;  %s224_s1 = inlined_call_operand.vmem [shape: bf16[32,16], index: 1, kind: input, shape index: {}]   ;;  %s225_s2 = inlined_call_operand.hbm [shape: bf16[16,16], index: 2, kind: output, shape index: {}]  }
   0x1   :  { %v151_v0 = vld [vmem:[%s224_s1] sm:$0xff]   ;;  %138 = vmatprep.subr.bf16.mxu0 %v178_v1  ;;  %v152_v2 = vld [vmem:[%s224_s1 + $0x8] sm:$0xff]   ;;  %142 = vmatprep.mubr.msk.bf16.mxu0 %vm179_vm0, %v178_v1 }
   0x2   :  { %139 = vmatpush3.bf16.msra.mxu0 %v151_v0 }
   0x3   :  { %140 = vmatprep.subr.bf16.mxu0 %v178_v1 }
   0x4   :  { %7 = vsyncpa [#allocation4], 0  ;;  %18 = vst.msk [vmem:[#allocation2] sm:$0xff] %vm17_vm1, %v178_v1  ;;  %v153_v3 = vld [vmem:[%s223_s0] sm:$0xff]   ;;  %vm45_vm2 = vcmask 261120   ;;  %s180_s1 = smov [#allocation3]  }
   0x5   :  { %19 = vst.msk [vmem:[#allocation2 + $0x8] sm:$0xff] %vm17_vm1, %v178_v1  ;;  %s116_s15 = sshll.u32 %s180_s1, 4  ;;  %vm108_vm3 = vcmask 125952   ;;  %s117_s15 = int_to_ptr.vmem [resolvable:$true] %s116_s15 }
   0x6   :  { %141 = vmatpush3.bf16.msra.mxu0 %v152_v2  ;;  %s154_s0 = scalar_lea.vmem %s117_s15, 128  ;;  %p159_p1 = scmp.lt.s32.totalorder %s117_s15, %s117_s15 }
   0x7   :  { %p155_p0 = scmp.ne.s32.totalorder %s117_s15, %s154_s0  ;;  %p160_p2 = scmp.lt.s32.totalorder %s154_s0, %s154_s0 }
   0x9   :  { %143 = vmatmul.mubr.msk.bf16.vlgmr.msra.gmra.mrb[0].mxu0 %vm45_vm2, %v153_v3  ;;  %p161_p3 = por %p160_p2, %p159_p1 }
   0xb   :  { %v20_v4 = vld [vmem:[#allocation2] sm:$0xff]  ;;  %p162_p4 = pnand %p161_p3, %p155_p0 }
   0xc   :  { %v21_v6 = vld [vmem:[#allocation2 + $0x8] sm:$0xff] }
  0xdc   :  { %v83_v5 = vpop.f32.mrb[0].mxu0 }
  0xdd   :  { %v90_v7 = vadd.f32 %v83_v5, %v20_v4  ;;  %v144_v8 = vpop.f32.mrb[1].mxu0 }
  0xde   :  { %v86_v9 = vpop.f32.mrb[2].mxu0 }
  0xdf   :  { %93 = vst.msk [vmem:[#allocation2] sm:$0xff] %vm17_vm1, %v90_v7  ;;  %v91_v10 = vadd.f32 %v86_v9, %v21_v6  ;;  %v145_v11 = vpop.f32.mrb[3].mxu0 }
  0xe1   :  { %94 = vst.msk [vmem:[#allocation2 + $0x8] sm:$0xff] %vm17_vm1, %v91_v10 }
  0xe6   :  { %v98_v12 = vld [vmem:[#allocation2] sm:$0xff] }
  0xe7   :  { %v133_v13 = vpack.c.bf16 %v98_v12, %v98_v12 }
  0xe8   :  { %v99_v14 = vld [vmem:[#allocation2 + $0x8] sm:$0xff] }
  0xe9   :  { %v134_v15 = vpack.c.bf16 %v99_v14, %v99_v14  ;;  %109 = vst.msk [vmem:[#allocation3] sm:$0xf] %vm108_vm3, %v133_v13 }
  0xeb   :  { %110 = vst.msk [vmem:[#allocation3 + $0x4] sm:$0xf] %vm108_vm3, %v134_v15 }
  0xec   :  { %165 = shalt.err (!%p162_p4)
}
  0xed   :  { %s166_s18 = scalar_lea.hbm %s225_s2, 128 }
  0xee   :  { %p167_p5 = scmp.ne.s32.totalorder %s225_s2, %s166_s18  ;;  %p170_p6 = scmp.lt.u32.totalorder %s166_s18, %s225_s2 }
  0xf0   :  { %p172_p7 = pnand %p170_p6, %p167_p5 }
  0xf2   :  { %175 = shalt.err (!%p172_p7)
}
  0xf3   :  { %s181_s23 = smov 64   ;;  %s182_s24 = smov 4  }
  0xf4   :  { %122 = dma.vmem_to_hbm [thread:$0]  %s117_s15, 128, %s225_s2, [#allocation4], %s181_s23, %s181_s23, %s182_s24  }
  0xf5   :  { %176 = dma.done.wait [#allocation4], 128  }
  0xf6   :  { %177 = vsyncadd [#allocation4], 4294967168 }
  0xf7   :  { %126 = vsyncpa [#allocation4], 1 }

</bundles_post_ra>
